<compile_context>
chip_gen: v7x
topology: tpu7x:2x2x1
jax: 0.10.0
libtpu: 0.0.40
codegen_flags: <defaults>
</compile_context>

<pallas_src>
import functools

import numpy as np
import jax
import jax.numpy as jnp
from jax.experimental import pallas as pl
from jax.experimental.pallas import tpu as pltpu


# ----------------------------- Pallas kernels ------------------------------

def _matmul_bias_kernel(x_ref, w_ref, b_ref, o_ref):
    # 1x1 conv (with bias): (TP, Cin) @ (Cin, Cout) + (1, Cout)
    o_ref[...] = (jnp.dot(x_ref[...], w_ref[...],
                          preferred_element_type=jnp.float32) + b_ref[...])


def _fpn_decoder_kernel(r5_ref, r4_ref, r3_ref, r2_ref,
                        w1_ref, b1_ref, w2_ref, b2_ref,
                        w3_ref, b3_ref, w4_ref, b4_ref,
                        m1_ref, m2_ref, m3_ref, o_ref):
    # One batch element per grid step. Feature maps are flattened (H*W, C) with C=128 on lanes.
    # mX_ref are kron(Wh, Ww) bilinear matrices (align_corners=False), so each upsample_add is
    # a single small matmul. Entire decoder fused: one launch, intermediates never leave VMEM.
    f32 = jnp.float32
    o1 = jnp.dot(r5_ref[0], w1_ref[...], preferred_element_type=f32) + b1_ref[...]
    o2 = (jnp.dot(m1_ref[...], o1, preferred_element_type=f32)
          + jnp.dot(r4_ref[0], w2_ref[...], preferred_element_type=f32) + b2_ref[...])
    o3 = (jnp.dot(m2_ref[...], o2, preferred_element_type=f32)
          + jnp.dot(r3_ref[0], w3_ref[...], preferred_element_type=f32) + b3_ref[...])
    o4 = (jnp.dot(m3_ref[...], o3, preferred_element_type=f32)
          + jnp.dot(r2_ref[0], w4_ref[...], preferred_element_type=f32) + b4_ref[...])
    o_ref[0] = o4


def _fused_head_kernel(x_ref, wt_ref, mt_ref, o_ref, *, k, num_sub_heads):
    # x_ref : (1, P2, 128)  decoder output for this batch element (P2 = H2*W2)
    # wt_ref: (num_sub_heads*k, 128)  concatenated, transposed sub-head conv weights
    # mt_ref: (P2, Hout*Wout)  transposed interior resize matrix kron(Wh_int, Ww_int)^T
    # o_ref : (1, num_sub_heads*k, Hout*Wout)  NCHW-flattened, lane-dense output
    inv_k = 1.0 / k
    # logits^T (SK, P2): contract channel dim of both operands (transposed-RHS matmul).
    logits_t = jax.lax.dot_general(
        wt_ref[...], x_ref[0], (((1,), (1,)), ((), ())),
        preferred_element_type=jnp.float32)
    for h in range(num_sub_heads):          # static unroll over sub-heads
        lg = logits_t[h * k:(h + 1) * k, :]                 # (k, P2)
        m = jnp.max(lg, axis=0, keepdims=True)              # softmax over channels (sublanes)
        e = jnp.exp(lg - m)
        sm = e / jnp.sum(e, axis=0, keepdims=True)
        # 1/K border pad + bilinear resize folded into one matmul (see header comment).
        out = jnp.dot(sm - inv_k, mt_ref[...],
                      preferred_element_type=jnp.float32) + inv_k
        o_ref[0, h * k:(h + 1) * k, :] = out                # (k, Hout*Wout), lane-dense store


# ------------------------------ helpers ------------------------------------

def _bilinear_matrix(out_size, in_size):
    """Row-stochastic interpolation matrix matching F.interpolate(mode='bilinear',
    align_corners=False)."""
    m = np.zeros((out_size, in_size), np.float32)
    scale = in_size / out_size
    for i in range(out_size):
        src = max((i + 0.5) * scale - 0.5, 0.0)
        i0 = int(np.floor(src))
        i0 = min(i0, in_size - 1)
        i1 = min(i0 + 1, in_size - 1)
        lam = src - i0
        m[i, i0] += 1.0 - lam
        m[i, i1] += lam
    return m


def _kron_interp(hout, wout, hin, win):
    """kron(Wh, Ww): (hout*wout, hin*win) acting on row-major flattened (hin, win) maps."""
    return np.kron(_bilinear_matrix(hout, hin), _bilinear_matrix(wout, win))


# ------------------------------ wrappers -----------------------------------

def conv1x1_bias(x_nhwc, w, b, tile_p=1024):
    """1x1 conv with bias on NHWC input; w: (Cin, Cout), b: (Cout,). Tiled over P so large
    inputs pipeline (weights stay resident); single step at small P."""
    N, H, W, Cin = x_nhwc.shape
    Cout = w.shape[1]
    P = N * H * W
    tp = P if P <= tile_p else tile_p
    out = pl.pallas_call(
        _matmul_bias_kernel,
        grid=(pl.cdiv(P, tp),),
        in_specs=[pl.BlockSpec((tp, Cin), lambda i: (i, 0)),
                  pl.BlockSpec((Cin, Cout), lambda i: (0, 0)),
                  pl.BlockSpec((1, Cout), lambda i: (0, 0))],
        out_specs=pl.BlockSpec((tp, Cout), lambda i: (i, 0)),
        out_shape=jax.ShapeDtypeStruct((P, Cout), jnp.float32),
        compiler_params=pltpu.CompilerParams(dimension_semantics=("parallel",)),
    )(x_nhwc.reshape(P, Cin), w, b.reshape(1, Cout))
    return out.reshape(N, H, W, Cout)


def fpn_decoder(feats, params):
    """resnet18 branch of FPNDecoder (out_dim=128), fully fused into one pallas_call.
    Returns o4 flattened as (N, H2*W2, 128) plus its spatial size."""
    r5, r4, r3, r2 = feats["res5"], feats["res4"], feats["res3"], feats["res2"]
    N, H5, W5, C5 = r5.shape
    _, H4, W4, C4 = r4.shape
    _, H3, W3, C3 = r3.shape
    _, H2, W2, C2 = r2.shape
    w1, b1 = params["dec_layer1"]
    w2, b2 = params["dec_layer2"]
    w3, b3 = params["dec_layer3"]
    w4, b4 = params["dec_layer4"]
    out_dim = w1.shape[1]

    m1 = jnp.asarray(_kron_interp(H4, W4, H5, W5))   # upsample o1 -> res4 grid
    m2 = jnp.asarray(_kron_interp(H3, W3, H4, W4))   # upsample o2 -> res3 grid
    m3 = jnp.asarray(_kron_interp(H2, W2, H3, W3))   # upsample o3 -> res2 grid

    b1r, b2r, b3r, b4r = (b.reshape(1, -1) for b in (b1, b2, b3, b4))

    def full2d(a):
        return pl.BlockSpec(a.shape, lambda n: (0, 0))

    def per_batch(hw, c):
        return pl.BlockSpec((1, hw, c), lambda n: (n, 0, 0))

    o4 = pl.pallas_call(
        _fpn_decoder_kernel,
        grid=(N,),
        in_specs=[per_batch(H5 * W5, C5), per_batch(H4 * W4, C4),
                  per_batch(H3 * W3, C3), per_batch(H2 * W2, C2),
                  full2d(w1), full2d(b1r), full2d(w2), full2d(b2r),
                  full2d(w3), full2d(b3r), full2d(w4), full2d(b4r),
                  full2d(m1), full2d(m2), full2d(m3)],
        out_specs=pl.BlockSpec((1, H2 * W2, out_dim), lambda n: (n, 0, 0)),
        out_shape=jax.ShapeDtypeStruct((N, H2 * W2, out_dim), jnp.float32),
        compiler_params=pltpu.CompilerParams(dimension_semantics=("parallel",)),
    )(r5.reshape(N, H5 * W5, C5), r4.reshape(N, H4 * W4, C4),
      r3.reshape(N, H3 * W3, C3), r2.reshape(N, H2 * W2, C2),
      w1, b1r, w2, b2r, w3, b3r, w4, b4r, m1, m2, m3)
    return o4, (H2, W2)


def fpn_head(o4_flat, spatial, head_weights, input_sz):
    """Fused FPNHead: conv1x1 (bias=False) + Softmax2d + 1/K border (padding=1) + bilinear
    resize to input_sz, all sub-heads in one pallas_call. Returns a list of NCHW arrays."""
    N, P2, C = o4_flat.shape
    H2, W2 = spatial
    num_sub_heads = len(head_weights)
    k = head_weights[0].shape[1]
    sk = num_sub_heads * k
    wt = jnp.concatenate(head_weights, axis=1).T            # (sk, C)

    Hp, Wp = H2 + 2, W2 + 2                                  # zero-pad border from padding=1
    if Wp != input_sz:                                       # mirrors `x_i.shape[-1] != input_sz`
        wh = _bilinear_matrix(input_sz, Hp)
        ww = _bilinear_matrix(input_sz, Wp)
        out_h = out_w = input_sz
    else:
        wh = np.eye(Hp, dtype=np.float32)
        ww = np.eye(Wp, dtype=np.float32)
        out_h, out_w = Hp, Wp
    # Interior-only resize matrix; the constant 1/K border contribution reduces to +1/K because
    # every interpolation row sums to 1. TODO(synk): for very large input_sz a separable
    # two-stage (rows-then-cols) resize would avoid materializing the kron matrix.
    m_int = np.kron(wh[:, 1:1 + H2], ww[:, 1:1 + W2])        # (out_h*out_w, H2*W2)
    mt = jnp.asarray(m_int.T)                                 # (P2, out_h*out_w)

    kern = functools.partial(_fused_head_kernel, k=k, num_sub_heads=num_sub_heads)
    out = pl.pallas_call(
        kern,
        grid=(N,),
        in_specs=[pl.BlockSpec((1, P2, C), lambda n: (n, 0, 0)),
                  pl.BlockSpec(wt.shape, lambda n: (0, 0)),
                  pl.BlockSpec(mt.shape, lambda n: (0, 0))],
        out_specs=pl.BlockSpec((1, sk, out_h * out_w), lambda n: (n, 0, 0)),
        out_shape=jax.ShapeDtypeStruct((N, sk, out_h * out_w), jnp.float32),
        compiler_params=pltpu.CompilerParams(dimension_semantics=("parallel",)),
    )(o4_flat, wt, mt)
    out = out.reshape(N, num_sub_heads, k, out_h, out_w)      # NCHW per sub-head
    return [out[:, h] for h in range(num_sub_heads)]


# ------------------------------ model parts --------------------------------

def backbone_stub(x_nchw, params):
    # TODO(synk): the real ResNet18 backbone comes from an external `backbone` module not
    # included in the reference source; this deterministic stand-in produces res2..res5
    # features with the correct strides (4/8/16/32) and channels (64/128/256/512) via
    # strided average pooling + Pallas 1x1 channel projections.
    x = jnp.transpose(x_nchw, (0, 2, 3, 1))  # -> NHWC
    feats = {}
    for name, stride in (("res2", 4), ("res3", 8), ("res4", 16), ("res5", 32)):
        N, H, W, C = x.shape
        pooled = x.reshape(N, H // stride, stride, W // stride, stride, C).mean(axis=(2, 4))
        w, b = params["bb_" + name]
        feats[name] = conv1x1_bias(pooled, w, b)
    return feats


def segmentation_net_forward(x_nchw, params, head="B"):
    feats = backbone_stub(x_nchw, params)
    o4_flat, spatial = fpn_decoder(feats, params)
    if head == "A":
        return fpn_head(o4_flat, spatial, params["head_A"], params["input_sz"])
    elif head == "B":
        return fpn_head(o4_flat, spatial, params["head_B"], params["input_sz"])
    else:
        raise AssertionError("head must be 'A' or 'B'")


# --------------------------- NumPy reference (self-check) -------------------

def _reference_decoder_head(feats, params, head_weights, input_sz):
    """Pure-NumPy float64 reference of decoder + head (unfused, literal semantics)."""
    f = {k: np.asarray(v, np.float64) for k, v in feats.items()}

    def conv(x, wb):
        w, b = wb
        return np.einsum('nhwc,cd->nhwd', x, np.asarray(w, np.float64)) + np.asarray(b, np.float64)

    def up(x, hout, wout):
        wh = _bilinear_matrix(hout, x.shape[1]).astype(np.float64)
        ww = _bilinear_matrix(wout, x.shape[2]).astype(np.float64)
        return np.einsum('ij,njkc,lk->nilc', wh, x, ww)

    o1 = conv(f['res5'], params['dec_layer1'])
    t = conv(f['res4'], params['dec_layer2']); o2 = up(o1, t.shape[1], t.shape[2]) + t
    t = conv(f['res3'], params['dec_layer3']); o3 = up(o2, t.shape[1], t.shape[2]) + t
    t = conv(f['res2'], params['dec_layer4']); o4 = up(o3, t.shape[1], t.shape[2]) + t

    outs = []
    for w in head_weights:
        w64 = np.asarray(w, np.float64)
        k = w64.shape[1]
        logits = np.einsum('nhwc,ck->nhwk', o4, w64)
        e = np.exp(logits - logits.max(axis=-1, keepdims=True))
        sm = e / e.sum(axis=-1, keepdims=True)
        padded = np.pad(sm, ((0, 0), (1, 1), (1, 1), (0, 0)), constant_values=1.0 / k)
        if padded.shape[2] != input_sz:
            padded = up(padded, input_sz, input_sz)
        outs.append(np.transpose(padded, (0, 3, 1, 2)))
    return outs


# ----------------------------- param init ----------------------------------

def init_params(key, in_ch=3, out_dim=128, output_k_A=4, output_k_B=8, num_sub_heads=2):
    keys = iter(jax.random.split(key, 32))

    def wmat(shape):
        fan_in = shape[0]
        return (jax.random.normal(next(keys), shape, jnp.float32)
                / np.float32(np.sqrt(fan_in))).astype(jnp.float32)

    def bvec(n):
        return (jax.random.normal(next(keys), (n,), jnp.float32) * 0.01).astype(jnp.float32)

    params = {
        # backbone stub channel projections
        "bb_res2": (wmat((in_ch, 64)), bvec(64)),
        "bb_res3": (wmat((in_ch, 128)), bvec(128)),
        "bb_res4": (wmat((in_ch, 256)), bvec(256)),
        "bb_res5": (wmat((in_ch, 512)), bvec(512)),
        # FPNDecoder 1x1 convs (resnet18: 512/256/128/64 -> 128, with bias)
        "dec_layer1": (wmat((512, out_dim)), bvec(out_dim)),
        "dec_layer2": (wmat((256, out_dim)), bvec(out_dim)),
        "dec_layer3": (wmat((128, out_dim)), bvec(out_dim)),
        "dec_layer4": (wmat((64, out_dim)), bvec(out_dim)),
        # FPNHead A / B: num_sub_heads 1x1 convs (bias=False) + Softmax2d
        "head_A": [wmat((out_dim, output_k_A)) for _ in range(num_sub_heads)],
        "head_B": [wmat((out_dim, output_k_B)) for _ in range(num_sub_heads)],
    }
    return params


# --------------------------------- main -------------------------------------

if __name__ == "__main__":
    key = jax.random.PRNGKey(0)
    pkey, xkey = jax.random.split(key)

    input_sz = 32          # config.input_sz
    output_k_A = 4         # config.output_k_A
    output_k_B = 8         # config.output_k_B
    num_sub_heads = 2      # config.num_sub_heads

    params = init_params(pkey, in_ch=3, out_dim=128,
                         output_k_A=output_k_A, output_k_B=output_k_B,
                         num_sub_heads=num_sub_heads)
    params["input_sz"] = input_sz

    x = jax.random.normal(xkey, (2, 3, input_sz, input_sz), jnp.float32)

    outs_B = segmentation_net_forward(x, params, head="B")
    outs_A = segmentation_net_forward(x, params, head="A")
    for o in outs_B + outs_A:
        jax.block_until_ready(o)

    assert len(outs_B) == num_sub_heads and len(outs_A) == num_sub_heads
    assert outs_B[0].shape == (2, output_k_B, input_sz, input_sz)
    assert outs_A[0].shape == (2, output_k_A, input_sz, input_sz)
    # each head output is a (resampled) per-pixel channel softmax -> sums to 1
    assert np.allclose(np.asarray(jnp.sum(outs_B[0], axis=1)), 1.0, atol=1e-4)
    assert np.allclose(np.asarray(jnp.sum(outs_A[1], axis=1)), 1.0, atol=1e-4)

    # numerical self-check of the fused decoder + heads against the unfused NumPy reference
    feats = backbone_stub(x, params)
    for head_name, outs in (("head_B", outs_B), ("head_A", outs_A)):
        refs = _reference_decoder_head(feats, params, params[head_name], input_sz)
        for got, ref in zip(outs, refs):
            assert np.allclose(np.asarray(got), ref, atol=2e-2, rtol=2e-2), head_name

    print("KERNEL_OK")
</pallas_src>

<mosaic_0001>
module attributes {stable_mosaic.version = 11 : i64} {
  func.func @_matmul_bias_kernel(%arg0: i32, %arg1: memref<128x3xf32, #tpu.memory_space<vmem>>, %arg2: memref<3x64xf32, #tpu.memory_space<vmem>>, %arg3: memref<1x64xf32, #tpu.memory_space<vmem>>, %arg4: memref<128x64xf32, #tpu.memory_space<vmem>>) attributes {dimension_semantics = [#tpu.dimension_semantics<parallel>], iteration_bounds = array<i64: 1>, scalar_prefetch = 0 : i64, scratch_operands = 0 : i64, tpu.core_type = #tpu.core_type<tc>, window_params = [{transform_indices = @transform_0, window_bounds = array<i64: 128, 3>}, {pipeline_mode = #tpu.pipeline_mode<synchronous>, transform_indices = @transform_1, window_bounds = array<i64: 3, 64>}, {pipeline_mode = #tpu.pipeline_mode<synchronous>, transform_indices = @transform_2, window_bounds = array<i64: 1, 64>}, {transform_indices = @transform_3, window_bounds = array<i64: 128, 64>}]} {
    %c0 = arith.constant 0 : index
    %c0_0 = arith.constant 0 : index
    %0 = vector.load %arg1[%c0, %c0_0] : memref<128x3xf32, #tpu.memory_space<vmem>>, vector<128x3xf32>
    %c0_1 = arith.constant 0 : index
    %c0_2 = arith.constant 0 : index
    %1 = vector.load %arg2[%c0_1, %c0_2] : memref<3x64xf32, #tpu.memory_space<vmem>>, vector<3x64xf32>
    %cst = arith.constant dense<0.000000e+00> : vector<128x64xf32>
    %2 = tpu.matmul %0, %1, %cst {dimension_numbers = #tpu.dot_dimension_numbers<[1], [0], [0], [1], [0, 0, 1, 1], [], []>} : vector<128x3xf32>, vector<3x64xf32>, vector<128x64xf32> -> vector<128x64xf32>
    %c0_3 = arith.constant 0 : index
    %c0_4 = arith.constant 0 : index
    %3 = vector.load %arg3[%c0_3, %c0_4] : memref<1x64xf32, #tpu.memory_space<vmem>>, vector<1x64xf32>
    %4 = vector.broadcast %3 : vector<1x64xf32> to vector<128x64xf32>
    %5 = arith.addf %2, %4 : vector<128x64xf32>
    %c0_5 = arith.constant 0 : index
    %c0_6 = arith.constant 0 : index
    %6 = vector.load %arg4[%c0_5, %c0_6] : memref<128x64xf32, #tpu.memory_space<vmem>>, vector<128x64xf32>
    tpu.vector_store %arg4[%c0_5, %c0_6], %5 {strides = array<i32>} : memref<128x64xf32, #tpu.memory_space<vmem>>, vector<128x64xf32>,
    return
  }
  func.func @transform_0(%arg0: i32) -> (i32, i32) {
    %c0_i32 = arith.constant 0 : i32
    %c0_i32_0 = arith.constant 0 : i32
    return %arg0, %c0_i32 : i32, i32
  }
  func.func @transform_1(%arg0: i32) -> (i32, i32) {
    %c0_i32 = arith.constant 0 : i32
    %c0_i32_0 = arith.constant 0 : i32
    %c0_i32_1 = arith.constant 0 : i32
    return %c0_i32, %c0_i32_0 : i32, i32
  }
  func.func @transform_2(%arg0: i32) -> (i32, i32) {
    %c0_i32 = arith.constant 0 : i32
    %c0_i32_0 = arith.constant 0 : i32
    %c0_i32_1 = arith.constant 0 : i32
    return %c0_i32, %c0_i32_0 : i32, i32
  }
  func.func @transform_3(%arg0: i32) -> (i32, i32) {
    %c0_i32 = arith.constant 0 : i32
    %c0_i32_0 = arith.constant 0 : i32
    return %arg0, %c0_i32 : i32, i32
  }
}

</mosaic_0001>

<bundles_post_ra>
// kernel: tpu_custom_call.1
= control target key start
LH: loop header
LB: loop body
LE: loop exit
PB: predicated region body
PF: predicated region fallthrough
CT: control target
= control target key end

     0   :  { %vm87_vm0 = vcmask 1042432   ;;  %vm38_vm1 = vcmask 23552   ;;  %vm236_vm2 = vcmask 523264   ;;  %s474_s1 = inlined_call_operand.vmem [shape: f32[3,64], index: 1, kind: input, shape index: {}]   ;;  %s475_s0 = inlined_call_operand.vmem [shape: f32[128,3], index: 0, kind: input, shape index: {}]   ;;  %s476_s2 = inlined_call_operand.vmem [shape: f32[1,64], index: 2, kind: input, shape index: {}]   ;;  %s477_s3 = inlined_call_operand.vmem [shape: f32[128,64], index: 3, kind: output, shape index: {}]  }
   0x1   :  { %v30_v0 = vld [vmem:[%s474_s1] sm:$0x7]  ;;  %v15_v3 = vld [vmem:[%s475_s0 + $0x8] sm:$0xff]  ;;  %v16_v5 = vld [vmem:[%s475_s0 + $0x10] sm:$0xff] }
   0x2   :  { %v14_v1 = vld [vmem:[%s475_s0] sm:$0xff]  ;;  %292 = vmatprep.subr.msk.mxu0 %vm87_vm0, %v30_v0  ;;  %318 = vmatprep.subr.msk.mxu1 %vm87_vm0, %v30_v0  ;;  %v23_v4 = vld [vmem:[%s475_s0 + $0x48] sm:$0xff]  ;;  %v24_v6 = vld [vmem:[%s475_s0 + $0x50] sm:$0xff] }
   0x3   :  { %v22_v2 = vld [vmem:[%s475_s0 + $0x40] sm:$0xff]  ;;  %293 = vmatpush3.msk.msra.mxu0 %vm87_vm0, %v30_v0  ;;  %319 = vmatpush3.msk.msra.mxu1 %vm87_vm0, %v30_v0  ;;  %v17_v7 = vld [vmem:[%s475_s0 + $0x18] sm:$0xff]  ;;  %v19_v11 = vld [vmem:[%s475_s0 + $0x28] sm:$0xff] }
   0x4   :  { %294 = vmatprep.mubr.msk.f32.mxu0 %vm38_vm1, %v14_v1  ;;  %306 = vmatprep.mubr.msk.f32.mxu1 %vm38_vm1, %v22_v2  ;;  %v25_v8 = vld [vmem:[%s475_s0 + $0x58] sm:$0xff]  ;;  %v18_v9 = vld [vmem:[%s475_s0 + $0x20] sm:$0xff]  ;;  %v27_v12 = vld [vmem:[%s475_s0 + $0x68] sm:$0xff] }
   0x5   :  { %295 = vmatmul.mubr.msk.f32.vlgmr.msra.gmra.mrb[0].mxu0 %vm38_vm1, %v15_v3  ;;  %307 = vmatmul.mubr.msk.f32.vlgmr.msra.gmra.mrb[0].mxu1 %vm38_vm1, %v23_v4  ;;  %v26_v10 = vld [vmem:[%s475_s0 + $0x60] sm:$0xff]  ;;  %v20_v13 = vld [vmem:[%s475_s0 + $0x30] sm:$0xff]  ;;  %v21_v15 = vld [vmem:[%s475_s0 + $0x38] sm:$0xff] }
   0x6   :  { %297 = vmatprep.mubr.msk.f32.mxu0 %vm38_vm1, %v16_v5  ;;  %309 = vmatprep.mubr.msk.f32.mxu1 %vm38_vm1, %v24_v6  ;;  %v28_v14 = vld [vmem:[%s475_s0 + $0x70] sm:$0xff]  ;;  %v29_v16 = vld [vmem:[%s475_s0 + $0x78] sm:$0xff]  ;;  %v257_v17 = vld [vmem:[%s476_s2] ss:$0 sm:$0xff] }
   0x9   :  { %298 = vmatmul.mubr.msk.f32.gmra.mrb[2].mxu0 %vm38_vm1, %v17_v7  ;;  %310 = vmatmul.mubr.msk.f32.gmra.mrb[2].mxu1 %vm38_vm1, %v25_v8 }
   0xa   :  { %300 = vmatprep.mubr.msk.f32.mxu0 %vm38_vm1, %v18_v9  ;;  %312 = vmatprep.mubr.msk.f32.mxu1 %vm38_vm1, %v26_v10 }
   0xd   :  { %301 = vmatmul.mubr.msk.f32.gmra.mrb[4].mxu0 %vm38_vm1, %v19_v11  ;;  %313 = vmatmul.mubr.msk.f32.gmra.mrb[4].mxu1 %vm38_vm1, %v27_v12 }
   0xe   :  { %303 = vmatprep.mubr.msk.f32.mxu0 %vm38_vm1, %v20_v13  ;;  %315 = vmatprep.mubr.msk.f32.mxu1 %vm38_vm1, %v28_v14 }
  0x11   :  { %304 = vmatmul.mubr.msk.f32.gmra.mrb[6].mxu0 %vm38_vm1, %v21_v15  ;;  %316 = vmatmul.mubr.msk.f32.gmra.mrb[6].mxu1 %vm38_vm1, %v29_v16 }
  0xd8   :  { %v296_v18 = vpop.f32.mrb[0].mxu0  ;;  %v308_v19 = vpop.f32.mrb[0].mxu1 }
  0xd9   :  { %v163_v20 = vadd.f32 %v296_v18, %v257_v17  ;;  %v203_v21 = vadd.f32 %v308_v19, %v257_v17  ;;  %v157_v22 = vpop.f32.mrb[1].mxu0  ;;  %v197_v23 = vpop.f32.mrb[1].mxu1 }
  0xda   :  { %v158_v24 = vadd.f32 %v257_v17, %v157_v22  ;;  %v198_v25 = vadd.f32 %v257_v17, %v197_v23 }
  0xdb   :  { %238 = vst.msk [vmem:[%s477_s3 + $0x8] sm:$0xff] %vm236_vm2, %v163_v20  ;;  %246 = vst.msk [vmem:[%s477_s3 + $0x48] sm:$0xff] %vm236_vm2, %v203_v21 }
  0xdc   :  { %237 = vst.msk [vmem:[%s477_s3] sm:$0xff] %vm236_vm2, %v158_v24  ;;  %245 = vst.msk [vmem:[%s477_s3 + $0x40] sm:$0xff] %vm236_vm2, %v198_v25  ;;  %v299_v26 = vpop.f32.mrb[2].mxu0  ;;  %v311_v27 = vpop.f32.mrb[2].mxu1 }
  0xdd   :  { %v173_v28 = vadd.f32 %v299_v26, %v257_v17  ;;  %v213_v29 = vadd.f32 %v311_v27, %v257_v17  ;;  %v167_v30 = vpop.f32.mrb[3].mxu0  ;;  %v207_v31 = vpop.f32.mrb[3].mxu1 }
  0xde   :  { %v168_v32 = vadd.f32 %v257_v17, %v167_v30  ;;  %v208_v33 = vadd.f32 %v257_v17, %v207_v31 }
  0xdf   :  { %240 = vst.msk [vmem:[%s477_s3 + $0x18] sm:$0xff] %vm236_vm2, %v173_v28  ;;  %248 = vst.msk [vmem:[%s477_s3 + $0x58] sm:$0xff] %vm236_vm2, %v213_v29 }
  0xe0   :  { %239 = vst.msk [vmem:[%s477_s3 + $0x10] sm:$0xff] %vm236_vm2, %v168_v32  ;;  %247 = vst.msk [vmem:[%s477_s3 + $0x50] sm:$0xff] %vm236_vm2, %v208_v33  ;;  %v302_v34 = vpop.f32.mrb[4].mxu0  ;;  %v314_v35 = vpop.f32.mrb[4].mxu1 }
  0xe1   :  { %v183_v36 = vadd.f32 %v302_v34, %v257_v17  ;;  %v223_v37 = vadd.f32 %v314_v35, %v257_v17  ;;  %v177_v38 = vpop.f32.mrb[5].mxu0  ;;  %v217_v39 = vpop.f32.mrb[5].mxu1 }
  0xe2   :  { %v178_v40 = vadd.f32 %v257_v17, %v177_v38  ;;  %v218_v41 = vadd.f32 %v257_v17, %v217_v39 }
  0xe3   :  { %242 = vst.msk [vmem:[%s477_s3 + $0x28] sm:$0xff] %vm236_vm2, %v183_v36  ;;  %250 = vst.msk [vmem:[%s477_s3 + $0x68] sm:$0xff] %vm236_vm2, %v223_v37 }
  0xe4   :  { %241 = vst.msk [vmem:[%s477_s3 + $0x20] sm:$0xff] %vm236_vm2, %v178_v40  ;;  %249 = vst.msk [vmem:[%s477_s3 + $0x60] sm:$0xff] %vm236_vm2, %v218_v41  ;;  %v305_v42 = vpop.f32.mrb[6].mxu0  ;;  %v317_v43 = vpop.f32.mrb[6].mxu1 }
  0xe5   :  { %v193_v44 = vadd.f32 %v305_v42, %v257_v17  ;;  %v233_v45 = vadd.f32 %v317_v43, %v257_v17  ;;  %v187_v46 = vpop.f32.mrb[7].mxu0  ;;  %v227_v47 = vpop.f32.mrb[7].mxu1 }
  0xe6   :  { %v188_v48 = vadd.f32 %v257_v17, %v187_v46  ;;  %v228_v49 = vadd.f32 %v257_v17, %v227_v47 }
  0xe7   :  { %244 = vst.msk [vmem:[%s477_s3 + $0x38] sm:$0xff] %vm236_vm2, %v193_v44  ;;  %252 = vst.msk [vmem:[%s477_s3 + $0x78] sm:$0xff] %vm236_vm2, %v233_v45 }
  0xe8   :  { %243 = vst.msk [vmem:[%s477_s3 + $0x30] sm:$0xff] %vm236_vm2, %v188_v48  ;;  %251 = vst.msk [vmem:[%s477_s3 + $0x70] sm:$0xff] %vm236_vm2, %v228_v49 }

</bundles_post_ra>
